<compile_context>
chip_gen: v7x
topology: tpu7x:2x2x1
jax: 0.10.0
libtpu: 0.0.40
codegen_flags: <defaults>
</compile_context>

<pallas_src>
import jax
import jax.numpy as jnp
from jax import lax
from jax.experimental import pallas as pl
from jax.experimental.pallas import tpu as pltpu


def _make_a2block_kernel(cp, hw_valid, hw_pad, bt):
    """Builds the kernel body for static (Cp, valid hw, padded hw, BT)."""
    padded = hw_pad != hw_valid

    def kernel(x_ref,        # (BT, Cin, hw_pad)  native dtype
               wdown_ref,    # (3*Cp, Cin)        x dtype (pre-cast in wrapper)
               bdown_ref,    # (3*Cp, 1)          f32
               wup_ref,      # (Cin, Cp)          x dtype
               bup_ref,      # (Cin, 1)           f32
               o_ref):       # (BT, Cin, hw_pad)
        # Lane-validity mask for padded hw columns.  Static branch; built once
        # per grid step and shared by all BT elements (broadcasts aren't CSE'd,
        # so it must live outside the per-element loop).
        if padded:
            col_valid = lax.broadcasted_iota(jnp.int32, (1, hw_pad), 1) < hw_valid

        # Grid-invariant operands: load once per step, reuse for all BT elems.
        w_down = wdown_ref[...]
        b_down = bdown_ref[...]
        w_up = wup_ref[...]
        b_up = bup_ref[...]
        mm_dtype = w_down.dtype          # == x dtype (wrapper pre-cast)

        def one_element(t, carry):
            x = x_ref[t]                                     # (Cin, hw_pad)

            # Fused 1x1 "down" convs: one MXU pass instead of three.
            abc = jnp.dot(w_down, x, preferred_element_type=jnp.float32)
            abc = abc + b_down                               # (3Cp, hw), f32

            a = abc[0:cp]                                    # (Cp, hw)
            bc = abc[cp:]                                    # (2Cp, hw): B,C stacked

            if padded:
                bc = jnp.where(col_valid, bc, -jnp.inf)      # pad cols -> prob 0

            # Single fused softmax pass over the stacked B/C slab (spatial
            # axis == PyTorch softmax(dim=-1)).  Reciprocal on the idle EUP.
            bc = jnp.exp(bc - jnp.max(bc, axis=-1, keepdims=True))
            bc = bc * pl.reciprocal(jnp.sum(bc, axis=-1, keepdims=True),
                                    approx=True)
            b_sm = bc[0:cp]
            c_sm = bc[cp:]

            # G^T[d, c] = sum_p B[d, p] * A[c, p]  (torch: G = A @ softmax(B)^T).
            # The hw contraction is expressed directly -- no XLU transpose of
            # the lane-major (Cp, hw) tiles.
            g_t = lax.dot_general(b_sm.astype(mm_dtype), a.astype(mm_dtype),
                                  dimension_numbers=(((1,), (1,)), ((), ())),
                                  preferred_element_type=jnp.float32)   # (Cp, Cp)

            # atten[d, p] = sum_c G^T[d, c] * C[c, p] == (softmax(C)^T @ G)^T,
            # already back in channel-major layout.
            atten = jnp.dot(g_t.astype(mm_dtype), c_sm.astype(mm_dtype),
                            preferred_element_type=jnp.float32)         # (Cp, hw)

            # 1x1 "up" conv back to Cin + residual (both in f32).
            up = jnp.dot(w_up, atten.astype(mm_dtype),
                         preferred_element_type=jnp.float32)
            up = up + b_up                                   # (Cin, hw)
            o_ref[t] = (x.astype(jnp.float32) + up).astype(o_ref.dtype)
            return carry

        if bt == 1:
            one_element(0, None)
        else:
            # Short, fixed trip count: fully unrolled for LLO visibility.
            lax.fori_loop(0, bt, one_element, None, unroll=True)

    return kernel


def _pick_block_batch(b, bytes_per_element):
    """Largest divisor of b giving ~<=1 MiB x blocks while keeping grid >= 2."""
    target = 1 << 20
    cap = max(1, target // max(bytes_per_element, 1))
    if b >= 2:
        cap = min(cap, b // 2)           # keep at least two grid steps
    bt = 1
    for d in range(1, b + 1):
        if b % d == 0 and d <= cap:
            bt = d
    return bt


def _pick_vmem_limit(per_step_bytes):
    """Scoped-VMEM limit from the real footprint, capped per TPU generation."""
    try:
        kind = jax.devices()[0].device_kind.lower()
    except Exception:
        kind = ""
    # v7x: 64 MiB VMEM per TensorCore -> stay well under; v5e/v6e: 128 MiB.
    cap = (48 if "v7" in kind else 96) * 1024 * 1024
    want = max(32 * 1024 * 1024, 4 * per_step_bytes)
    return int(min(want, cap))


def a2block_pallas(x_nchw, params):
    """x_nchw: (b, Cin, h, w). params: PyTorch-layout 1x1-conv weights/biases."""
    b, cin, h, w = x_nchw.shape
    hw = h * w
    cp = params["wu"].shape[1]
    dtype = x_nchw.dtype
    itemsize = jnp.dtype(dtype).itemsize

    # NCHW -> (b, Cin, hw): a free reshape, NOT an HBM transpose.  Pad hw up
    # to a multiple of 128 so loads/stores stay unmasked full-lane vld/vst;
    # padded columns are masked out of the softmax inside the kernel.
    hw_pad = ((hw + 127) // 128) * 128
    x_k = x_nchw.reshape(b, cin, hw)
    if hw_pad != hw:
        x_k = jnp.pad(x_k, ((0, 0), (0, 0), (0, hw_pad - hw)))

    # Fuse the three "down" 1x1 convs into one (3Cp, Cin) weight and pre-cast
    # the matmul weights to x's dtype ONCE in XLA (grid-invariant), instead of
    # a VPU cast every grid step.  Biases stay f32 (added in f32 in-kernel).
    w_down = jnp.concatenate([params["wd"], params["wg"], params["wc"]],
                             axis=0).astype(dtype)
    b_down = jnp.concatenate([params["bd"], params["bg"], params["bc"]],
                             axis=0).astype(jnp.float32)
    w_up = params["wu"].astype(dtype)
    b_up = params["bu"].astype(jnp.float32)

    # Block BT batch elements per grid step to amortize per-step fixed cost.
    bt = _pick_block_batch(b, cin * hw_pad * itemsize)
    grid = (b // bt,)

    def const2d(arr):
        return pl.BlockSpec(arr.shape, lambda i: (0, 0))

    xo_spec = pl.BlockSpec((bt, cin, hw_pad), lambda i: (i, 0, 0))

    # Per-step VMEM footprint: double-buffered x/out blocks + weights + f32
    # intermediates (abc, softmax slab, atten) for one in-flight element.
    block_bytes = bt * cin * hw_pad * itemsize
    weight_bytes = ((w_down.size + w_up.size) * itemsize
                    + (b_down.size + b_up.size) * 4)
    inter_bytes = (3 * cp + 2 * cp + cp) * hw_pad * 4
    per_step_bytes = 2 * 2 * block_bytes + weight_bytes + inter_bytes

    flops = b * (2 * hw * cin * 3 * cp     # fused down projection
                 + 2 * hw * cp * cp        # G
                 + 2 * hw * cp * cp        # atten
                 + 2 * hw * cp * cin)      # up projection
    transcendentals = b * 2 * hw * cp      # fused softmax exp
    bytes_accessed = int(2 * b * cin * hw_pad * itemsize + weight_bytes)

    kernel = _make_a2block_kernel(cp, hw, hw_pad, bt)

    # TODO(synk): for very large h*w on v7x (64 MiB VMEM/TC), add an hw-tiled
    # two-pass / online-softmax path instead of a single full-hw block.
    out = pl.pallas_call(
        kernel,
        out_shape=jax.ShapeDtypeStruct((b, cin, hw_pad), dtype),
        grid_spec=pltpu.PrefetchScalarGridSpec(
            num_scalar_prefetch=0,
            grid=grid,
            in_specs=[
                xo_spec,
                const2d(w_down), const2d(b_down),
                const2d(w_up), const2d(b_up),
            ],
            out_specs=xo_spec,
        ),
        compiler_params=pltpu.CompilerParams(
            dimension_semantics=("parallel",),              # batch across cores
            vmem_limit_bytes=_pick_vmem_limit(per_step_bytes)),
        cost_estimate=pl.CostEstimate(flops=flops,
                                      transcendentals=transcendentals,
                                      bytes_accessed=bytes_accessed),
    )(x_k, w_down, b_down, w_up, b_up)

    # Drop hw padding; (b, Cin, hw) -> NCHW is a free reshape.
    return out[:, :, :hw].reshape(b, cin, h, w)


def a2block_reference(x_nchw, params):
    """Pure-JAX replica of the PyTorch forward (NCHW)."""
    b, cin, h, w = x_nchw.shape
    hw = h * w
    x = x_nchw.reshape(b, cin, hw)                      # (b, Cin, hw)

    def conv1x1(v, W, bias):                            # W: (Cout, Cin), bias: (Cout, 1)
        return jnp.einsum("oc,bcp->bop", W, v) + bias[None]

    A = conv1x1(x, params["wd"], params["bd"])                           # (b, Cp, hw)
    B = jax.nn.softmax(conv1x1(x, params["wg"], params["bg"]), axis=-1)  # softmax over hw
    C = jax.nn.softmax(conv1x1(x, params["wc"], params["bc"]), axis=-1)
    G = jnp.einsum("bcp,bdp->bcd", A, B)                 # (b, Cp, Cp)  = A @ B^T
    atten = jnp.einsum("bcd,bcp->bdp", G, C)             # (b, Cp, hw)  = G^T @ C
    up = conv1x1(atten, params["wu"], params["bu"])      # (b, Cin, hw)
    return (x + up).reshape(b, cin, h, w)


def make_params(key, inplane, plane):
    ks = jax.random.split(key, 8)
    s = 0.2
    # Weights kept in PyTorch 1x1-conv layout (Cout, Cin); biases (Cout, 1).
    return {
        "wd": s * jax.random.normal(ks[0], (plane, inplane), jnp.float32),
        "bd": s * jax.random.normal(ks[1], (plane, 1), jnp.float32),
        "wg": s * jax.random.normal(ks[2], (plane, inplane), jnp.float32),
        "bg": s * jax.random.normal(ks[3], (plane, 1), jnp.float32),
        "wc": s * jax.random.normal(ks[4], (plane, inplane), jnp.float32),
        "bc": s * jax.random.normal(ks[5], (plane, 1), jnp.float32),
        "wu": s * jax.random.normal(ks[6], (inplane, plane), jnp.float32),
        "bu": s * jax.random.normal(ks[7], (inplane, 1), jnp.float32),
    }


if __name__ == "__main__":
    key = jax.random.PRNGKey(0)
    kx, kp = jax.random.split(key)

    b, inplane, plane, h, w = 2, 4, 8, 16, 16
    x = jax.random.normal(kx, (b, inplane, h, w), jnp.float32)
    params = make_params(kp, inplane, plane)

    out = jax.block_until_ready(a2block_pallas(x, params))
    ref = a2block_reference(x, params)

    assert out.shape == (b, inplane, h, w)
    # Tolerance absorbs the EUP approx reciprocal in the softmax denominators.
    assert jnp.allclose(out, ref, atol=5e-3, rtol=5e-3), "mismatch vs reference"

    print("KERNEL_OK")
</pallas_src>

<mosaic_0001>
module attributes {stable_mosaic.version = 11 : i64} {
  func.func @kernel(%arg0: i32, %arg1: memref<1x4x256xf32, #tpu.memory_space<vmem>>, %arg2: memref<24x4xf32, #tpu.memory_space<vmem>>, %arg3: memref<24x1xf32, #tpu.memory_space<vmem>>, %arg4: memref<4x8xf32, #tpu.memory_space<vmem>>, %arg5: memref<4x1xf32, #tpu.memory_space<vmem>>, %arg6: memref<1x4x256xf32, #tpu.memory_space<vmem>>) attributes {dimension_semantics = [#tpu.dimension_semantics<parallel>], iteration_bounds = array<i64: 2>, scalar_prefetch = 0 : i64, scratch_operands = 0 : i64, tpu.core_type = #tpu.core_type<tc>, window_params = [{transform_indices = @transform_0, window_bounds = array<i64: 1, 4, 256>}, {pipeline_mode = #tpu.pipeline_mode<synchronous>, transform_indices = @transform_1, window_bounds = array<i64: 24, 4>}, {pipeline_mode = #tpu.pipeline_mode<synchronous>, transform_indices = @transform_2, window_bounds = array<i64: 24, 1>}, {pipeline_mode = #tpu.pipeline_mode<synchronous>, transform_indices = @transform_3, window_bounds = array<i64: 4, 8>}, {pipeline_mode = #tpu.pipeline_mode<synchronous>, transform_indices = @transform_4, window_bounds = array<i64: 4, 1>}, {transform_indices = @transform_5, window_bounds = array<i64: 1, 4, 256>}]} {
    %c0 = arith.constant 0 : index
    %c0_0 = arith.constant 0 : index
    %0 = vector.load %arg2[%c0, %c0_0] : memref<24x4xf32, #tpu.memory_space<vmem>>, vector<24x4xf32>
    %c0_1 = arith.constant 0 : index
    %c0_2 = arith.constant 0 : index
    %1 = vector.load %arg3[%c0_1, %c0_2] : memref<24x1xf32, #tpu.memory_space<vmem>>, vector<24x1xf32>
    %c0_3 = arith.constant 0 : index
    %c0_4 = arith.constant 0 : index
    %2 = vector.load %arg4[%c0_3, %c0_4] : memref<4x8xf32, #tpu.memory_space<vmem>>, vector<4x8xf32>
    %c0_5 = arith.constant 0 : index
    %c0_6 = arith.constant 0 : index
    %3 = vector.load %arg5[%c0_5, %c0_6] : memref<4x1xf32, #tpu.memory_space<vmem>>, vector<4x1xf32>
    %c0_7 = arith.constant 0 : index
    %c0_8 = arith.constant 0 : index
    %c0_9 = arith.constant 0 : index
    %4 = vector.load %arg1[%c0_7, %c0_8, %c0_9] : memref<1x4x256xf32, #tpu.memory_space<vmem>>, vector<1x4x256xf32>
    %5 = vector.shape_cast %4 : vector<1x4x256xf32> to vector<4x256xf32>
    %cst = arith.constant dense<0.000000e+00> : vector<24x256xf32>
    %6 = tpu.matmul %0, %5, %cst {dimension_numbers = #tpu.dot_dimension_numbers<[1], [0], [0], [1], [0, 0, 1, 1], [], []>} : vector<24x4xf32>, vector<4x256xf32>, vector<24x256xf32> -> vector<24x256xf32>
    %7 = vector.broadcast %1 : vector<24x1xf32> to vector<24x256xf32>
    %8 = arith.addf %6, %7 : vector<24x256xf32>
    %9 = vector.extract_strided_slice %8 {offsets = [0, 0], sizes = [8, 256], strides = [1, 1]} : vector<24x256xf32> to vector<8x256xf32>
    %10 = vector.extract_strided_slice %8 {offsets = [8, 0], sizes = [16, 256], strides = [1, 1]} : vector<24x256xf32> to vector<16x256xf32>
    %cst_10 = arith.constant dense<0xFF800000> : vector<16xf32>
    %11 = vector.multi_reduction <maximumf>, %10, %cst_10 [1] : vector<16x256xf32> to vector<16xf32>
    %12 = vector.shape_cast %11 : vector<16xf32> to vector<16x1xf32>
    %13 = vector.broadcast %12 : vector<16x1xf32> to vector<16x256xf32>
    %14 = arith.subf %10, %13 : vector<16x256xf32>
    %15 = math.exp %14 : vector<16x256xf32>
    %cst_11 = arith.constant dense<0.000000e+00> : vector<16xf32>
    %16 = vector.multi_reduction <add>, %15, %cst_11 [1] : vector<16x256xf32> to vector<16xf32>
    %17 = vector.shape_cast %16 : vector<16xf32> to vector<16x1xf32>
    %18 = tpu.reciprocal %17 {approx = true} : vector<16x1xf32> -> vector<16x1xf32>
    %19 = vector.broadcast %18 : vector<16x1xf32> to vector<16x256xf32>
    %20 = arith.mulf %15, %19 : vector<16x256xf32>
    %21 = vector.extract_strided_slice %20 {offsets = [0, 0], sizes = [8, 256], strides = [1, 1]} : vector<16x256xf32> to vector<8x256xf32>
    %22 = vector.extract_strided_slice %20 {offsets = [8, 0], sizes = [8, 256], strides = [1, 1]} : vector<16x256xf32> to vector<8x256xf32>
    %cst_12 = arith.constant dense<0.000000e+00> : vector<8x8xf32>
    %23 = tpu.matmul %21, %9, %cst_12 {dimension_numbers = #tpu.dot_dimension_numbers<[1], [1], [0], [0], [0, 0, 1, 0], [], []>} : vector<8x256xf32>, vector<8x256xf32>, vector<8x8xf32> -> vector<8x8xf32>
    %cst_13 = arith.constant dense<0.000000e+00> : vector<8x256xf32>
    %24 = tpu.matmul %23, %22, %cst_13 {dimension_numbers = #tpu.dot_dimension_numbers<[1], [0], [0], [1], [0, 0, 1, 1], [], []>} : vector<8x8xf32>, vector<8x256xf32>, vector<8x256xf32> -> vector<8x256xf32>
    %cst_14 = arith.constant dense<0.000000e+00> : vector<4x256xf32>
    %25 = tpu.matmul %2, %24, %cst_14 {dimension_numbers = #tpu.dot_dimension_numbers<[1], [0], [0], [1], [0, 0, 1, 1], [], []>} : vector<4x8xf32>, vector<8x256xf32>, vector<4x256xf32> -> vector<4x256xf32>
    %26 = vector.broadcast %3 : vector<4x1xf32> to vector<4x256xf32>
    %27 = arith.addf %25, %26 : vector<4x256xf32>
    %28 = arith.addf %5, %27 : vector<4x256xf32>
    %c0_15 = arith.constant 0 : index
    %c0_16 = arith.constant 0 : index
    %c0_17 = arith.constant 0 : index
    %29 = vector.load %arg6[%c0_15, %c0_16, %c0_17] : memref<1x4x256xf32, #tpu.memory_space<vmem>>, vector<1x4x256xf32>
    %30 = vector.shape_cast %29 : vector<1x4x256xf32> to vector<4x256xf32>
    %31 = vector.shape_cast %28 : vector<4x256xf32> to vector<1x4x256xf32>
    tpu.vector_store %arg6[%c0_15, %c0_16, %c0_17], %31 {strides = array<i32>} : memref<1x4x256xf32, #tpu.memory_space<vmem>>, vector<1x4x256xf32>,
    return
  }
  func.func @transform_0(%arg0: i32) -> (i32, i32, i32) {
    %c0_i32 = arith.constant 0 : i32
    %c0_i32_0 = arith.constant 0 : i32
    %c0_i32_1 = arith.constant 0 : i32
    return %arg0, %c0_i32, %c0_i32_0 : i32, i32, i32
  }
  func.func @transform_1(%arg0: i32) -> (i32, i32) {
    %c0_i32 = arith.constant 0 : i32
    %c0_i32_0 = arith.constant 0 : i32
    %c0_i32_1 = arith.constant 0 : i32
    return %c0_i32, %c0_i32_0 : i32, i32
  }
  func.func @transform_2(%arg0: i32) -> (i32, i32) {
    %c0_i32 = arith.constant 0 : i32
    %c0_i32_0 = arith.constant 0 : i32
    %c0_i32_1 = arith.constant 0 : i32
    return %c0_i32, %c0_i32_0 : i32, i32
  }
  func.func @transform_3(%arg0: i32) -> (i32, i32) {
    %c0_i32 = arith.constant 0 : i32
    %c0_i32_0 = arith.constant 0 : i32
    %c0_i32_1 = arith.constant 0 : i32
    return %c0_i32, %c0_i32_0 : i32, i32
  }
  func.func @transform_4(%arg0: i32) -> (i32, i32) {
    %c0_i32 = arith.constant 0 : i32
    %c0_i32_0 = arith.constant 0 : i32
    %c0_i32_1 = arith.constant 0 : i32
    return %c0_i32, %c0_i32_0 : i32, i32
  }
  func.func @transform_5(%arg0: i32) -> (i32, i32, i32) {
    %c0_i32 = arith.constant 0 : i32
    %c0_i32_0 = arith.constant 0 : i32
    %c0_i32_1 = arith.constant 0 : i32
    return %arg0, %c0_i32, %c0_i32_0 : i32, i32, i32
  }
}

</mosaic_0001>

<bundles_post_ra>
// kernel: tpu_custom_call.1
= control target key start
LH: loop header
LB: loop body
LE: loop exit
PB: predicated region body
PF: predicated region fallthrough
CT: control target
= control target key end

     0   :  { %10 = vsyncpa [#allocation3], 0  ;;  %s990_s0 = inlined_call_operand.vmem [shape: f32[2,4,256], index: 0, kind: input, shape index: {}]   ;;  %s991_s1 = inlined_call_operand.vmem [shape: f32[24,4], index: 1, kind: input, shape index: {}]   ;;  %s992_s2 = inlined_call_operand.vmem [shape: f32[24,1], index: 2, kind: input, shape index: {}]   ;;  %s993_s3 = inlined_call_operand.vmem [shape: f32[4,8], index: 3, kind: input, shape index: {}]   ;;  %s994_s4 = inlined_call_operand.vmem [shape: f32[4,1], index: 4, kind: input, shape index: {}]   ;;  %s995_s5 = inlined_call_operand.hbm [shape: f32[2,4,256], index: 5, kind: output, shape index: {}]  }
   0x1   :  { %12 = vsyncpa [#allocation3 + $0x1], 0  ;;  %s855_s18 = smov 0   ;;  %s857_s19 = smov 0  }
   0x2   :  { %s859_s20 = smov 0   ;;  %s861_s21 = smov 0  }
   0x3 LB: > { %s876_s22 = sadd.s32 4294967295, %s820_s21   ;;  %s681_s23 = sadd.s32 4294967294, %s820_s21   ;;  %s820_s21 = sphi %s861_s21, %s1001_s21   ;;  %s816_s20 = sphi %s859_s20, %s1000_s20   ;;  %s812_s19 = sphi %s857_s19, %s999_s19   ;;  %s808_s18 = sphi %s855_s18, %s998_s18  }
   0x4   : > { %s880_s24 = sadd.s32 1, %s820_s21   ;;  %s135_s25 = sadd.s32 1, %s816_s20 }
   0x5   : > { %s132_s26 = ssub.s32 %s820_s21, %s880_s24  ;;  %p145_p0 = scmp.ne.s32.totalorder %s816_s20, %s812_s19 }
   0x6   : > { %p133_p1 = scmp.eq.s32.totalorder %s132_s26, 0  ;;  %p146_p2 = scmp.eq.s32.totalorder %s876_s22, 1 }
   0x7   : > { %p151_p3 = scmp.ne.s32.totalorder %s812_s19, %s808_s18  ;;  %p152_p4 = scmp.eq.s32.totalorder %s681_s23, 1 }
   0x8   : > { %s891_s27 = scalar_select %p133_p1, %s816_s20, %s135_s25  }
   0x9   : > { %p893_p5 = por %p146_p2, %p145_p0  ;;  %p897_p6 = por %p152_p4, %p151_p3 }
   0xa   : > { %p684_p7 = scmp.ge.s32.totalorder %s820_s21, 1  ;;  %p190_p8 = scmp.lt.s32.totalorder %s820_s21, 3 }
   0xc   : > { %p191_p9 = pnand %p684_p7, %p190_p8 }
   0xd   : > { %p218_p10 = scmp.lt.s32.totalorder (!%p191_p9), %s876_s22, 1  ;;  %v822_v0 = vmov (!%p191_p9), 0.0   ;;  %v227_v1 = vld [vmem:[%s992_s2 + $0x8] sm:$0xff] (!%p191_p9)  ;;  %v823_v2 = vmov (!%p191_p9), 0   ;;  %vm259_vm0 = vcmask (!%p191_p9), 1043456   ;;  %v223_v5 = vld [vmem:[%s991_s1] sm:$0xff] (!%p191_p9) }
   0xe   : > { %194 = sbr.rel (%p191_p9) target bundleno = 1330 (0x532), region = 40  ;;  %328 = vmatprep.mubr.f32.mxu0 (!%p191_p9), %v822_v0  ;;  %743 = vset.pattern.permute.xlu0 (!%p191_p9), %v823_v2  ;;  %vm249_vm1 = vcmask (!%p191_p9), 31744   ;;  %v224_v6 = vld [vmem:[%s991_s1 + $0x8] sm:$0xff] (!%p191_p9)  ;;  %v225_v7 = vld [vmem:[%s991_s1 + $0x10] sm:$0xff] (!%p191_p9)  ;;  %v226_v24 = vld [vmem:[%s992_s2] sm:$0xff] (!%p191_p9)  ;;  %vm447_vm2 = vcmask (!%p191_p9), 64512  }
   0xf   : > { %744 = vset.pattern.permute.xlu1 (!%p191_p9), %v823_v2  ;;  %239 = vperm.xlu0 (!%p191_p9), %743, %v227_v1   ;;  %v228_v26 = vld [vmem:[%s992_s2 + $0x10] sm:$0xff] (!%p191_p9)  ;;  %v230_v47 = vld [vmem:[%s994_s4] sm:$0xf] (!%p191_p9)  ;;  %s215_s10 = sand.u32 (!%p191_p9), 1, %s812_s19   ;;  %s701_s12 = sshll.u32 (!%p191_p9), %s876_s22, 7 }
  0x10   : > { %v229_v56 = vld [vmem:[%s993_s3] sm:$0xf] (!%p191_p9)  ;;  %s948_s17 = scalar_lea.hbm (!%p191_p9), %s995_s5, %s701_s12  ;;  %s608_s23 = scalar_lea.sflag (!%p191_p9), [#allocation3], %s215_s10 }
  0x15   : > { %s219_s7 = scalar_select %p218_p10, %s876_s22, 1 }
  0x16   : > { %s824_s22 = smov [#allocation2]  }
  0x17   : > { %s700_s8 = sshll.u32 %s219_s7, 3  ;;  %s762_s26 = sshll.u32 %s824_s22, 4  ;;  %s763_s26 = int_to_ptr.vmem [resolvable:$false] %s762_s26 }
  0x18   : > { %s222_s11 = scalar_lea.vmem %s990_s0, %s700_s8  ;;  %s764_s30 = scalar_lea.vmem %s763_s26, 256 }
  0x19   : > { %v912_v3 = vld [vmem:[%s222_s11] sm:$0xff]  ;;  %s685_s11 = sshll.u32 %s215_s10, 3 }
  0x1a   : > { %v248_v4 = vcombine.high %v912_v3, %v912_v3  ;;  %s217_s13 = scalar_lea.vmem [#allocation2], %s685_s11 }
  0x1b   : > { %s622_s14 = sshll.u32 %s217_s13, 4  ;;  %s950_s14 = int_to_ptr.vmem [resolvable:$true] %s622_s14 }
  0x1c   : > { %688 = vmatprep.subr.msk.mxu0 %vm259_vm0, %v248_v4  ;;  %s758_s25 = scalar_lea.vmem %s950_s14, 128  ;;  %p765_p0 = scmp.lt.s32.totalorder %s950_s14, %s763_s26 }
  0x1d   : > { %689 = vmatpush1.msk.msra.mxu0 %vm259_vm0, %v912_v3  ;;  %p759_p11 = scmp.ne.s32.totalorder %s950_s14, %s758_s25  ;;  %p766_p1 = scmp.lt.s32.totalorder %s764_s30, %s758_s25 }
  0x1e   : > { %690 = vmatmul.mubr.msk.f32.vlgmr.msra.gmra.mrb[0].mxu0 %vm249_vm1, %v223_v5 }
  0x1f   : > { %334 = vmatprep.mubr.f32.mxu0 %v822_v0  ;;  %p760_p12 = pnand %p759_p11, %p893_p5  ;;  %p767_p2 = por %p766_p1, %p765_p0 }
  0x21   : > { %p761_p13 = pneg %p760_p12 }
  0x22   : > { %691 = vmatmul.mubr.msk.f32.gmra.mrb[2].mxu0 %vm249_vm1, %v224_v6 }
  0x23   : > { %340 = vmatprep.mubr.f32.mxu0 %v822_v0  ;;  %p768_p3 = pnand %p767_p2, %p761_p13 }
  0x26   : > { %692 = vmatmul.mubr.msk.f32.gmra.mrb[4].mxu0 %vm249_vm1, %v225_v7 }
  0x8e   : > { %v240_v10 = vpop.permute.xlu0 %239 }
  0xf1   : > { %v330_v8 = vpop.f32.mrb[0].mxu0 }
  0xf2   : > { %v332_v9 = vpop.f32.mrb[1].mxu0 }
  0xf5   : > { %v336_v11 = vpop.f32.mrb[2].mxu0 }
  0xf6   : > { %v337_v12 = vadd.f32 %v336_v11, %v240_v10  ;;  %v338_v13 = vpop.f32.mrb[3].mxu0 }
  0xf7   : > { %v339_v14 = vadd.f32 %v338_v13, %v240_v10 }
  0xf9   : > { %v347_v15 = vmax.f32 %v337_v12, %v339_v14  ;;  %v342_v25 = vpop.f32.mrb[4].mxu0 }
  0xfa   : > { %v344_v27 = vpop.f32.mrb[5].mxu0 }
  0xfb   : > { %348 = vmax.xlane.f32.xlu0 %v347_v15 }
 0x188   : > { %v349_v16 = vpop.xlane.xlu0 %348 }
 0x189   : > { %v353_v17 = vsub.f32 %v337_v12, %v349_v16  ;;  %v354_v18 = vsub.f32 %v339_v14, %v349_v16 }
 0x18b   : > { %v357_v19 = vmul.f32 1.442695, %v353_v17  ;;  %v359_v20 = vmul.f32 1.442695, %v354_v18 }
 0x18d   : > { %746 = vpow2.f32 %v357_v19 }
 0x18e   : > { %748 = vpow2.f32 %v359_v20 }
 0x197   : > { %v747_v21 = vpop.eup %746 }
 0x198   : > { %v749_v22 = vpop.eup %748 }
 0x199   : > { %v365_v23 = vadd.f32 %v749_v22, %v747_v21 }
 0x19b   : > { %366 = vadd.xlane.f32.xlu1 %v365_v23 }
 0x1ac   : > { %234 = vperm.xlu1 %744, %v226_v24  }
 0x1b0   : > { %244 = vperm.xlu1 %744, %v228_v26  }
 0x228   : > { %v367_v28 = vpop.xlane.xlu1 %366 }
 0x229   : > { %750 = vrcp.f32 %v367_v28 }
 0x22c   : > { %v235_v29 = vpop.permute.xlu1 %234 }
 0x22d   : > { %v333_v30 = vadd.f32 %v332_v9, %v235_v29  ;;  %v331_v31 = vadd.f32 %v330_v8, %v235_v29 }
 0x22f   : > { %377 = vmatprep.subr.mxu1 %v333_v30 }
 0x230   : > { %378 = vmatpush1.xpose.msra.mxu1 %v331_v31  ;;  %v245_v32 = vpop.permute.xlu1 %244 }
 0x231   : > { %v343_v33 = vadd.f32 %v342_v25, %v245_v32  ;;  %v345_v34 = vadd.f32 %v344_v27, %v245_v32 }
 0x233   : > { %v751_v35 = vpop.eup %750  ;;  %v350_v36 = vmax.f32 %v343_v33, %v345_v34 }
 0x234   : > { %v374_v37 = vmul.f32 %v751_v35, %v749_v22  ;;  %v373_v38 = vmul.f32 %v751_v35, %v747_v21 }
 0x235   : > { %351 = vmax.xlane.f32.xlu1 %v350_v36 }
 0x236   : > { %441 = vmatprep.mubr.f32.mxu1 %v374_v37 }
 0x237   : > { %442 = vmatmul.mubr.f32.vlgmr.msra.gmra.mrb[0].mxu1 %v373_v38 }
 0x238   : > { %515 = vmatprep.mubr.f32.mxu1 %v822_v0 }
 0x2c2   : > { %v352_v39 = vpop.xlane.xlu1 %351 }
 0x2c3   : > { %v355_v40 = vsub.f32 %v343_v33, %v352_v39  ;;  %v356_v41 = vsub.f32 %v345_v34, %v352_v39 }
 0x2c5   : > { %v361_v42 = vmul.f32 1.442695, %v355_v40  ;;  %v363_v43 = vmul.f32 1.442695, %v356_v41 }
 0x2c7   : > { %752 = vpow2.f32 %v361_v42 }
 0x2c8   : > { %754 = vpow2.f32 %v363_v43 }
 0x2d1   : > { %v753_v44 = vpop.eup %752 }
 0x2d2   : > { %v755_v45 = vpop.eup %754 }
 0x2d3   : > { %v368_v46 = vadd.f32 %v755_v45, %v753_v44 }
 0x2d5   : > { %369 = vadd.xlane.f32.xlu0 %v368_v46 }
 0x2eb   : > { %524 = vperm.xlu0 %743, %v230_v47  }
 0x30a   : > { %v443_v48 = vpop.f32.mrb[0].mxu1 }
 0x30b   : > { %v445_v49 = vpop.f32.mrb[1].mxu1 }
 0x362   : > { %v370_v50 = vpop.xlane.xlu0 %369 }
 0x363   : > { %756 = vrcp.f32 %v370_v50 }
 0x36a   : > { %v525_v57 = vpop.permute.xlu0 %524 }
 0x36d   : > { %v757_v51 = vpop.eup %756 }
 0x36e   : > { %v376_v52 = vmul.f32 %v757_v51, %v755_v45  ;;  %v375_v53 = vmul.f32 %v757_v51, %v753_v44 }
 0x370   : > { %451 = vmatprep.subr.mxu1 %v376_v52 }
 0x371   : > { %452 = vmatpush1.msra.mxu1 %v375_v53 }
 0x372   : > { %693 = vmatmul.mubr.msk.f32.vlgmr.msra.gmra.mrb[2].mxu1 %vm447_vm2, %v443_v48 }
 0x373   : > { %594 = vmatprep.mubr.f32.mxu1 %v822_v0 }
 0x445   : > { %v517_v54 = vpop.f32.mrb[2].mxu1 }
 0x446   : > { %v519_v55 = vpop.f32.mrb[3].mxu1 }
 0x447   : > { %530 = vmatprep.subr.mxu1 %v519_v55 }
 0x448   : > { %531 = vmatpush1.msra.mxu1 %v517_v54 }
 0x449   : > { %694 = vmatmul.mubr.msk.f32.vlgmr.msra.gmra.mrb[4].mxu1 %vm447_vm2, %v229_v56 }
 0x51c   : > { %v596_v58 = vpop.f32.mrb[4].mxu1 }
 0x51d   : > { %v597_v59 = vadd.f32 %v596_v58, %v525_v57  ;;  %v598_v60 = vpop.f32.mrb[5].mxu1 }
 0x51e   : > { %v599_v61 = vadd.f32 %v598_v60, %v525_v57 }
 0x520   : > { %v603_v62 = vcombine.low %v597_v59, %v599_v61 }
 0x522   : > { %v605_v63 = vadd.f32 %v603_v62, %v912_v3 }
 0x524   : > { %606 = vst [vmem:[%s217_s13] sm:$0xff] %v605_v63 }
 0x525   : > { %771 = shalt.err (!%p768_p3)
}
 0x526   : > { %s772_s6 = scalar_lea.hbm %s948_s17, 128  ;;  %s776_s9 = scalar_lea.hbm %s995_s5, 256 }
 0x527   : > { %p773_p4 = scmp.ne.s32.totalorder %s948_s17, %s772_s6  ;;  %p777_p9 = scmp.lt.u32.totalorder %s948_s17, %s995_s5 }
 0x528   : > { %p778_p10 = scmp.lt.u32.totalorder %s776_s9, %s772_s6  ;;  %p780_p12 = scmp.lt.u32.totalorder %s772_s6, %s948_s17 }
 0x529   : > { %p774_p7 = pnand %p773_p4, %p893_p5 }
 0x52a   : > { %p779_p11 = por %p778_p10, %p777_p9 }
 0x52b   : > { %p775_p8 = pneg %p774_p7 }
 0x52c   : > { %p781_p13 = por %p780_p12, %p779_p11 }
 0x52e   : > { %p782_p0 = pnand %p781_p13, %p775_p8 }
 0x530   : > { %785 = shalt.err (!%p782_p0)
}
 0x531   : > { %702 = dma.vmem_to_hbm [thread:$0]  (%p893_p5), %s950_s14, 128, %s948_s17, %s608_s23  }
 0x532 PF: > { %p708_p1 = scmp.ge.s32.totalorder %s820_s21, 2  ;;  %s634_s12 = sand.u32 1, %s808_s18  }
 0x533   : > { %s635_s13 = scalar_lea.sflag [#allocation3], %s634_s12 }
 0x534   : > { %p705_p2 = pnand %p708_p1, %p897_p6 }
 0x536   : > { %803 = dma.done.wait (!%p705_p2), %s635_s13, 128  }
 0x537   : > { %805 = vsyncadd (!%p705_p2), %s635_s13, 4294967168  ;;  %p15_p3 = scmp.ge.s32.totalorder %s880_s24, 4   ;;  %s998_s18 = smov %s812_s19 }
 0x538   : > { %s999_s19 = smov %s816_s20  ;;  %s1000_s20 = smov %s891_s27 }
 0x539   : > { %s1001_s21 = smov %s880_s24  ;;  %17 = sbr.rel (!%p15_p3) target bundleno = 3 (0x3), region = 75 }
 0x540   :  { %640 = vsyncpa [#allocation3], 1 }
 0x541   :  { %642 = vsyncpa [#allocation3 + $0x1], 1 }

</bundles_post_ra>
